<compile_context>
chip_gen: v6e
topology: v6e:2x2x1
jax: 0.10.0
libtpu: 0.0.40
codegen_flags: <defaults>
</compile_context>

<pallas_src>
import numpy as np
import jax
import jax.numpy as jnp
from jax.experimental import pallas as pl
from jax.experimental.pallas import tpu as pltpu


def xconv_bn_relu2(x_nchw, params):
    (w_dw1, b_dw1, g1, be1, w_dw2, b_dw2, w_1x1, b_1x1, g2, be2) = params
    # Conv biases are per-channel constants removed exactly by the following
    # training-mode BN mean subtraction -> drop them (output unchanged).
    del b_dw1, b_dw2, b_1x1

    N, Cin, H, W = x_nchw.shape
    Cout = w_1x1.shape[0]
    NC, HW = N * Cin, H * W

    # ---------------- wrapper-side layout plumbing (tiny / free) ----------------
    # NCHW -> lane-dense (N*Cin, H*W) slab (contiguous reshape, no transpose).
    x_slab = x_nchw.reshape(NC, HW).astype(jnp.float32)

    # Depthwise weights for both convs packed as (18, NC, 1):
    #   wdw[9*j + k, n*Cin + c, 0] = w_dw{j+1}[c, 0, k//3, k%3]
    def dw_rows(w):                                            # (Cin,1,3,3) -> (9, NC, 1)
        w9c = jnp.transpose(w[:, 0].reshape(Cin, 9), (1, 0))   # (9, Cin)
        return jnp.tile(w9c, (1, N)).reshape(9, NC, 1)
    w_dw = jnp.concatenate([dw_rows(w_dw1), dw_rows(w_dw2)], axis=0)
    w_dw = w_dw.astype(jnp.float32)                            # (18, NC, 1)

    # 1x1 conv weight -> (Cin, Cout, 1) so w3[c] loads as a sublane column.
    w3 = jnp.transpose(w_1x1[:, :, 0, 0], (1, 0)).reshape(Cin, Cout, 1)
    w3 = w3.astype(jnp.float32)

    # BN params packed as (2, C, 1): row 0 = gamma, row 1 = beta.
    def bn_pack(g, b):
        return jnp.stack([g, b], axis=0).reshape(2, -1, 1).astype(jnp.float32)
    bn1 = bn_pack(g1, be1)
    bn2 = bn_pack(g2, be2)

    # Static per-lane validity masks for the 9 shifted taps (numpy constant,
    # shared by both depthwise convs).  masks[k, i] == 1 iff tap (k//3-1, k%3-1)
    # of flat pixel i stays inside the HxW image.
    hh = np.arange(HW, dtype=np.int64) // W
    ww = np.arange(HW, dtype=np.int64) % W
    masks_np = np.empty((9, HW), np.float32)
    for k in range(9):
        dh, dw = k // 3 - 1, k % 3 - 1
        ok = (hh + dh >= 0) & (hh + dh < H) & (ww + dw >= 0) & (ww + dw < W)
        masks_np[k] = ok.astype(np.float32)
    masks = jnp.asarray(masks_np)

    # ------------------------------- kernel -------------------------------------
    def kernel(x_ref, mask_ref, wdw_ref, w3_ref, bn1_ref, bn2_ref, o_ref):
        eps = jnp.float32(1e-5)
        inv_cnt = jnp.float32(1.0 / (N * HW))          # BN count per channel = N*H*W

        def depthwise3x3(v, base):
            # 9 taps = XLU lane-rolls of the flat (h*W + w) axis, masked at the
            # image border (per-lane {0,1} mask) and scaled by the per-row
            # channel weight -> VPU FMAs.  No padded scratch.
            acc = None
            for k in range(9):
                dh, dw = k // 3 - 1, k % 3 - 1
                off = dh * W + dw
                sh = v if off == 0 else pltpu.roll(v, (-off) % HW, axis=1)
                term = sh * wdw_ref[base + k]          # (NC,HW) * (NC,1) lane bcast
                if not (dh == 0 and dw == 0):
                    term = term * mask_ref[k]          # (HW,) sublane bcast
                acc = term if acc is None else acc + term
            return acc                                  # (NC, HW)

        def batchnorm(y3, bn_ref, C):
            # PyTorch training-mode batch stats over (N, H, W), biased variance.
            s = jnp.sum(jnp.sum(y3, axis=2, keepdims=True), axis=0, keepdims=True)
            mean = s * inv_cnt
            d = y3 - mean
            ss = jnp.sum(jnp.sum(d * d, axis=2, keepdims=True), axis=0, keepdims=True)
            var = ss * inv_cnt
            gamma = bn_ref[0].reshape(1, C, 1)
            beta = bn_ref[1].reshape(1, C, 1)
            return d * (jax.lax.rsqrt(var + eps) * gamma) + beta

        x = x_ref[...]                                  # (NC, HW), lane-dense

        # conv3x3_1 (depthwise, groups=Cin); bias cancelled by norm1.
        y1 = depthwise3x3(x, 0).reshape(N, Cin, HW)
        # norm1 (batch stats); beta1 kept (does not cancel: conv3x3_2 zero-pads).
        y1 = batchnorm(y1, bn1_ref, Cin).reshape(NC, HW)

        # conv3x3_2 (depthwise); bias cancelled by norm2.
        y2 = depthwise3x3(y1, 9).reshape(N, Cin, HW)

        # conv1x1 as Cin broadcast-FMAs on the VPU; bias cancelled by norm2.
        z = None
        for c in range(Cin):
            term = y2[:, c:c + 1, :] * w3_ref[c].reshape(1, Cout, 1)
            z = term if z is None else z + term         # (N, Cout, HW)

        # norm2 + ReLU, stored as one lane-dense (N, Cout, H*W) slab.
        o_ref[...] = jnp.maximum(batchnorm(z, bn2_ref, Cout), jnp.float32(0.0))

    vmem = pl.BlockSpec(memory_space=pltpu.MemorySpace.VMEM)
    out3 = pl.pallas_call(
        kernel,
        out_shape=jax.ShapeDtypeStruct((N, Cout, HW), jnp.float32),
        in_specs=[vmem] * 6,
        out_specs=vmem,
    )(x_slab, masks, w_dw, w3, bn1, bn2)

    return out3.reshape(N, Cout, H, W)                  # free reshape back to NCHW


def reference_nchw(x, params):
    """Pure-JAX reference mirroring the PyTorch module (training-mode BN)."""
    (w_dw1, b_dw1, g1, be1, w_dw2, b_dw2, w_1x1, b_1x1, g2, be2) = params
    Cin = x.shape[1]
    eps = 1e-5

    def dwconv(x, w, b):
        y = jax.lax.conv_general_dilated(
            x, w, window_strides=(1, 1), padding=((1, 1), (1, 1)),
            dimension_numbers=('NCHW', 'OIHW', 'NCHW'),
            feature_group_count=Cin)
        return y + b.reshape(1, -1, 1, 1)

    def bn(y, g, b):
        m = jnp.mean(y, axis=(0, 2, 3), keepdims=True)
        v = jnp.mean((y - m) ** 2, axis=(0, 2, 3), keepdims=True)
        return (y - m) / jnp.sqrt(v + eps) * g.reshape(1, -1, 1, 1) + b.reshape(1, -1, 1, 1)

    y = dwconv(x, w_dw1, b_dw1)
    y = bn(y, g1, be1)
    y = dwconv(y, w_dw2, b_dw2)
    y = jax.lax.conv_general_dilated(
        y, w_1x1, window_strides=(1, 1), padding=((0, 0), (0, 0)),
        dimension_numbers=('NCHW', 'OIHW', 'NCHW'))
    y = y + b_1x1.reshape(1, -1, 1, 1)
    y = bn(y, g2, be2)
    return jnp.maximum(y, 0.0)


if __name__ == "__main__":
    N, Cin, H, W, Cout = 2, 4, 16, 16, 16
    keys = jax.random.split(jax.random.PRNGKey(0), 11)

    x = jax.random.normal(keys[0], (N, Cin, H, W), jnp.float32)
    w_dw1 = 0.2 * jax.random.normal(keys[1], (Cin, 1, 3, 3), jnp.float32)
    b_dw1 = 0.1 * jax.random.normal(keys[2], (Cin,), jnp.float32)
    g1 = 1.0 + 0.1 * jax.random.normal(keys[3], (Cin,), jnp.float32)
    be1 = 0.1 * jax.random.normal(keys[4], (Cin,), jnp.float32)
    w_dw2 = 0.2 * jax.random.normal(keys[5], (Cin, 1, 3, 3), jnp.float32)
    b_dw2 = 0.1 * jax.random.normal(keys[6], (Cin,), jnp.float32)
    w_1x1 = 0.2 * jax.random.normal(keys[7], (Cout, Cin, 1, 1), jnp.float32)
    b_1x1 = 0.1 * jax.random.normal(keys[8], (Cout,), jnp.float32)
    g2 = 1.0 + 0.1 * jax.random.normal(keys[9], (Cout,), jnp.float32)
    be2 = 0.1 * jax.random.normal(keys[10], (Cout,), jnp.float32)
    params = (w_dw1, b_dw1, g1, be1, w_dw2, b_dw2, w_1x1, b_1x1, g2, be2)

    out = xconv_bn_relu2(x, params)
    out = jax.block_until_ready(out)

    ref = reference_nchw(x, params)
    assert out.shape == (N, Cout, H, W)
    np.testing.assert_allclose(np.asarray(out), np.asarray(ref), atol=1e-3, rtol=1e-3)
    print("KERNEL_OK")
</pallas_src>

<mosaic_0001>
module attributes {stable_mosaic.version = 11 : i64} {
  func.func @kernel(%arg0: memref<8x256xf32, #tpu.memory_space<vmem>>, %arg1: memref<9x256xf32, #tpu.memory_space<vmem>>, %arg2: memref<18x8x1xf32, #tpu.memory_space<vmem>>, %arg3: memref<4x16x1xf32, #tpu.memory_space<vmem>>, %arg4: memref<2x4x1xf32, #tpu.memory_space<vmem>>, %arg5: memref<2x16x1xf32, #tpu.memory_space<vmem>>, %arg6: memref<2x16x256xf32, #tpu.memory_space<vmem>>) attributes {dimension_semantics = [], scalar_prefetch = 0 : i64, scratch_operands = 0 : i64, tpu.core_type = #tpu.core_type<tc>} {
    %c0 = arith.constant 0 : index
    %c0_0 = arith.constant 0 : index
    %0 = vector.load %arg0[%c0, %c0_0] : memref<8x256xf32, #tpu.memory_space<vmem>>, vector<8x256xf32>
    %c17_i32 = arith.constant 17 : i32
    %1 = tpu.dynamic_rotate %0 by %c17_i32 dim 1 : vector<8x256xf32>, i32 -> vector<8x256xf32>
    %c0_1 = arith.constant 0 : index
    %c0_2 = arith.constant 0 : index
    %c0_3 = arith.constant 0 : index
    %2 = vector.load %arg2[%c0_1, %c0_2, %c0_3] : memref<18x8x1xf32, #tpu.memory_space<vmem>>, vector<1x8x1xf32>
    %3 = vector.shape_cast %2 : vector<1x8x1xf32> to vector<8x1xf32>
    %4 = vector.broadcast %3 : vector<8x1xf32> to vector<8x256xf32>
    %5 = arith.mulf %1, %4 : vector<8x256xf32>
    %c0_4 = arith.constant 0 : index
    %c0_5 = arith.constant 0 : index
    %6 = vector.load %arg1[%c0_4, %c0_5] : memref<9x256xf32, #tpu.memory_space<vmem>>, vector<1x256xf32>
    %7 = vector.shape_cast %6 : vector<1x256xf32> to vector<256xf32>
    %8 = vector.shape_cast %7 : vector<256xf32> to vector<1x256xf32>
    %9 = vector.broadcast %8 : vector<1x256xf32> to vector<8x256xf32>
    %10 = arith.mulf %5, %9 : vector<8x256xf32>
    %c16_i32 = arith.constant 16 : i32
    %11 = tpu.dynamic_rotate %0 by %c16_i32 dim 1 : vector<8x256xf32>, i32 -> vector<8x256xf32>
    %c1 = arith.constant 1 : index
    %c0_6 = arith.constant 0 : index
    %c0_7 = arith.constant 0 : index
    %12 = vector.load %arg2[%c1, %c0_6, %c0_7] : memref<18x8x1xf32, #tpu.memory_space<vmem>>, vector<1x8x1xf32>
    %13 = vector.shape_cast %12 : vector<1x8x1xf32> to vector<8x1xf32>
    %14 = vector.broadcast %13 : vector<8x1xf32> to vector<8x256xf32>
    %15 = arith.mulf %11, %14 : vector<8x256xf32>
    %c1_8 = arith.constant 1 : index
    %c0_9 = arith.constant 0 : index
    %16 = vector.load %arg1[%c1_8, %c0_9] : memref<9x256xf32, #tpu.memory_space<vmem>>, vector<1x256xf32>
    %17 = vector.shape_cast %16 : vector<1x256xf32> to vector<256xf32>
    %18 = vector.shape_cast %17 : vector<256xf32> to vector<1x256xf32>
    %19 = vector.broadcast %18 : vector<1x256xf32> to vector<8x256xf32>
    %20 = arith.mulf %15, %19 : vector<8x256xf32>
    %21 = arith.addf %10, %20 : vector<8x256xf32>
    %c15_i32 = arith.constant 15 : i32
    %22 = tpu.dynamic_rotate %0 by %c15_i32 dim 1 : vector<8x256xf32>, i32 -> vector<8x256xf32>
    %c2 = arith.constant 2 : index
    %c0_10 = arith.constant 0 : index
    %c0_11 = arith.constant 0 : index
    %23 = vector.load %arg2[%c2, %c0_10, %c0_11] : memref<18x8x1xf32, #tpu.memory_space<vmem>>, vector<1x8x1xf32>
    %24 = vector.shape_cast %23 : vector<1x8x1xf32> to vector<8x1xf32>
    %25 = vector.broadcast %24 : vector<8x1xf32> to vector<8x256xf32>
    %26 = arith.mulf %22, %25 : vector<8x256xf32>
    %c2_12 = arith.constant 2 : index
    %c0_13 = arith.constant 0 : index
    %27 = vector.load %arg1[%c2_12, %c0_13] : memref<9x256xf32, #tpu.memory_space<vmem>>, vector<1x256xf32>
    %28 = vector.shape_cast %27 : vector<1x256xf32> to vector<256xf32>
    %29 = vector.shape_cast %28 : vector<256xf32> to vector<1x256xf32>
    %30 = vector.broadcast %29 : vector<1x256xf32> to vector<8x256xf32>
    %31 = arith.mulf %26, %30 : vector<8x256xf32>
    %32 = arith.addf %21, %31 : vector<8x256xf32>
    %c1_i32 = arith.constant 1 : i32
    %33 = tpu.dynamic_rotate %0 by %c1_i32 dim 1 : vector<8x256xf32>, i32 -> vector<8x256xf32>
    %c3 = arith.constant 3 : index
    %c0_14 = arith.constant 0 : index
    %c0_15 = arith.constant 0 : index
    %34 = vector.load %arg2[%c3, %c0_14, %c0_15] : memref<18x8x1xf32, #tpu.memory_space<vmem>>, vector<1x8x1xf32>
    %35 = vector.shape_cast %34 : vector<1x8x1xf32> to vector<8x1xf32>
    %36 = vector.broadcast %35 : vector<8x1xf32> to vector<8x256xf32>
    %37 = arith.mulf %33, %36 : vector<8x256xf32>
    %c3_16 = arith.constant 3 : index
    %c0_17 = arith.constant 0 : index
    %38 = vector.load %arg1[%c3_16, %c0_17] : memref<9x256xf32, #tpu.memory_space<vmem>>, vector<1x256xf32>
    %39 = vector.shape_cast %38 : vector<1x256xf32> to vector<256xf32>
    %40 = vector.shape_cast %39 : vector<256xf32> to vector<1x256xf32>
    %41 = vector.broadcast %40 : vector<1x256xf32> to vector<8x256xf32>
    %42 = arith.mulf %37, %41 : vector<8x256xf32>
    %43 = arith.addf %32, %42 : vector<8x256xf32>
    %c4 = arith.constant 4 : index
    %c0_18 = arith.constant 0 : index
    %c0_19 = arith.constant 0 : index
    %44 = vector.load %arg2[%c4, %c0_18, %c0_19] : memref<18x8x1xf32, #tpu.memory_space<vmem>>, vector<1x8x1xf32>
    %45 = vector.shape_cast %44 : vector<1x8x1xf32> to vector<8x1xf32>
    %46 = vector.broadcast %45 : vector<8x1xf32> to vector<8x256xf32>
    %47 = arith.mulf %0, %46 : vector<8x256xf32>
    %48 = arith.addf %43, %47 : vector<8x256xf32>
    %c255_i32 = arith.constant 255 : i32
    %49 = tpu.dynamic_rotate %0 by %c255_i32 dim 1 : vector<8x256xf32>, i32 -> vector<8x256xf32>
    %c5 = arith.constant 5 : index
    %c0_20 = arith.constant 0 : index
    %c0_21 = arith.constant 0 : index
    %50 = vector.load %arg2[%c5, %c0_20, %c0_21] : memref<18x8x1xf32, #tpu.memory_space<vmem>>, vector<1x8x1xf32>
    %51 = vector.shape_cast %50 : vector<1x8x1xf32> to vector<8x1xf32>
    %52 = vector.broadcast %51 : vector<8x1xf32> to vector<8x256xf32>
    %53 = arith.mulf %49, %52 : vector<8x256xf32>
    %c5_22 = arith.constant 5 : index
    %c0_23 = arith.constant 0 : index
    %54 = vector.load %arg1[%c5_22, %c0_23] : memref<9x256xf32, #tpu.memory_space<vmem>>, vector<1x256xf32>
    %55 = vector.shape_cast %54 : vector<1x256xf32> to vector<256xf32>
    %56 = vector.shape_cast %55 : vector<256xf32> to vector<1x256xf32>
    %57 = vector.broadcast %56 : vector<1x256xf32> to vector<8x256xf32>
    %58 = arith.mulf %53, %57 : vector<8x256xf32>
    %59 = arith.addf %48, %58 : vector<8x256xf32>
    %c241_i32 = arith.constant 241 : i32
    %60 = tpu.dynamic_rotate %0 by %c241_i32 dim 1 : vector<8x256xf32>, i32 -> vector<8x256xf32>
    %c6 = arith.constant 6 : index
    %c0_24 = arith.constant 0 : index
    %c0_25 = arith.constant 0 : index
    %61 = vector.load %arg2[%c6, %c0_24, %c0_25] : memref<18x8x1xf32, #tpu.memory_space<vmem>>, vector<1x8x1xf32>
    %62 = vector.shape_cast %61 : vector<1x8x1xf32> to vector<8x1xf32>
    %63 = vector.broadcast %62 : vector<8x1xf32> to vector<8x256xf32>
    %64 = arith.mulf %60, %63 : vector<8x256xf32>
    %c6_26 = arith.constant 6 : index
    %c0_27 = arith.constant 0 : index
    %65 = vector.load %arg1[%c6_26, %c0_27] : memref<9x256xf32, #tpu.memory_space<vmem>>, vector<1x256xf32>
    %66 = vector.shape_cast %65 : vector<1x256xf32> to vector<256xf32>
    %67 = vector.shape_cast %66 : vector<256xf32> to vector<1x256xf32>
    %68 = vector.broadcast %67 : vector<1x256xf32> to vector<8x256xf32>
    %69 = arith.mulf %64, %68 : vector<8x256xf32>
    %70 = arith.addf %59, %69 : vector<8x256xf32>
    %c240_i32 = arith.constant 240 : i32
    %71 = tpu.dynamic_rotate %0 by %c240_i32 dim 1 : vector<8x256xf32>, i32 -> vector<8x256xf32>
    %c7 = arith.constant 7 : index
    %c0_28 = arith.constant 0 : index
    %c0_29 = arith.constant 0 : index
    %72 = vector.load %arg2[%c7, %c0_28, %c0_29] : memref<18x8x1xf32, #tpu.memory_space<vmem>>, vector<1x8x1xf32>
    %73 = vector.shape_cast %72 : vector<1x8x1xf32> to vector<8x1xf32>
    %74 = vector.broadcast %73 : vector<8x1xf32> to vector<8x256xf32>
    %75 = arith.mulf %71, %74 : vector<8x256xf32>
    %c7_30 = arith.constant 7 : index
    %c0_31 = arith.constant 0 : index
    %76 = vector.load %arg1[%c7_30, %c0_31] : memref<9x256xf32, #tpu.memory_space<vmem>>, vector<1x256xf32>
    %77 = vector.shape_cast %76 : vector<1x256xf32> to vector<256xf32>
    %78 = vector.shape_cast %77 : vector<256xf32> to vector<1x256xf32>
    %79 = vector.broadcast %78 : vector<1x256xf32> to vector<8x256xf32>
    %80 = arith.mulf %75, %79 : vector<8x256xf32>
    %81 = arith.addf %70, %80 : vector<8x256xf32>
    %c239_i32 = arith.constant 239 : i32
    %82 = tpu.dynamic_rotate %0 by %c239_i32 dim 1 : vector<8x256xf32>, i32 -> vector<8x256xf32>
    %c8 = arith.constant 8 : index
    %c0_32 = arith.constant 0 : index
    %c0_33 = arith.constant 0 : index
    %83 = vector.load %arg2[%c8, %c0_32, %c0_33] : memref<18x8x1xf32, #tpu.memory_space<vmem>>, vector<1x8x1xf32>
    %84 = vector.shape_cast %83 : vector<1x8x1xf32> to vector<8x1xf32>
    %85 = vector.broadcast %84 : vector<8x1xf32> to vector<8x256xf32>
    %86 = arith.mulf %82, %85 : vector<8x256xf32>
    %c8_34 = arith.constant 8 : index
    %c0_35 = arith.constant 0 : index
    %87 = vector.load %arg1[%c8_34, %c0_35] : memref<9x256xf32, #tpu.memory_space<vmem>>, vector<1x256xf32>
    %88 = vector.shape_cast %87 : vector<1x256xf32> to vector<256xf32>
    %89 = vector.shape_cast %88 : vector<256xf32> to vector<1x256xf32>
    %90 = vector.broadcast %89 : vector<1x256xf32> to vector<8x256xf32>
    %91 = arith.mulf %86, %90 : vector<8x256xf32>
    %92 = arith.addf %81, %91 : vector<8x256xf32>
    %93 = vector.shape_cast %92 : vector<8x256xf32> to vector<2x4x256xf32>
    %cst = arith.constant dense<0.000000e+00> : vector<2x4xf32>
    %94 = vector.multi_reduction <add>, %93, %cst [2] : vector<2x4x256xf32> to vector<2x4xf32>
    %95 = vector.shape_cast %94 : vector<2x4xf32> to vector<2x4x1xf32>
    %cst_36 = arith.constant dense<0.000000e+00> : vector<4x1xf32>
    %96 = vector.multi_reduction <add>, %95, %cst_36 [0] : vector<2x4x1xf32> to vector<4x1xf32>
    %97 = vector.shape_cast %96 : vector<4x1xf32> to vector<1x4x1xf32>
    %cst_37 = arith.constant 0.001953125 : f32
    %98 = vector.broadcast %cst_37 : f32 to vector<1x4x1xf32>
    %99 = arith.mulf %97, %98 : vector<1x4x1xf32>
    %100 = vector.broadcast %99 : vector<1x4x1xf32> to vector<2x4x256xf32>
    %101 = arith.subf %93, %100 : vector<2x4x256xf32>
    %102 = arith.mulf %101, %101 : vector<2x4x256xf32>
    %cst_38 = arith.constant dense<0.000000e+00> : vector<2x4xf32>
    %103 = vector.multi_reduction <add>, %102, %cst_38 [2] : vector<2x4x256xf32> to vector<2x4xf32>
    %104 = vector.shape_cast %103 : vector<2x4xf32> to vector<2x4x1xf32>
    %cst_39 = arith.constant dense<0.000000e+00> : vector<4x1xf32>
    %105 = vector.multi_reduction <add>, %104, %cst_39 [0] : vector<2x4x1xf32> to vector<4x1xf32>
    %106 = vector.shape_cast %105 : vector<4x1xf32> to vector<1x4x1xf32>
    %cst_40 = arith.constant 0.001953125 : f32
    %107 = vector.broadcast %cst_40 : f32 to vector<1x4x1xf32>
    %108 = arith.mulf %106, %107 : vector<1x4x1xf32>
    %c0_41 = arith.constant 0 : index
    %c0_42 = arith.constant 0 : index
    %c0_43 = arith.constant 0 : index
    %109 = vector.load %arg4[%c0_41, %c0_42, %c0_43] : memref<2x4x1xf32, #tpu.memory_space<vmem>>, vector<1x4x1xf32>
    %110 = vector.shape_cast %109 : vector<1x4x1xf32> to vector<4x1xf32>
    %111 = vector.shape_cast %110 : vector<4x1xf32> to vector<1x4x1xf32>
    %c1_44 = arith.constant 1 : index
    %c0_45 = arith.constant 0 : index
    %c0_46 = arith.constant 0 : index
    %112 = vector.load %arg4[%c1_44, %c0_45, %c0_46] : memref<2x4x1xf32, #tpu.memory_space<vmem>>, vector<1x4x1xf32>
    %113 = vector.shape_cast %112 : vector<1x4x1xf32> to vector<4x1xf32>
    %114 = vector.shape_cast %113 : vector<4x1xf32> to vector<1x4x1xf32>
    %cst_47 = arith.constant 9.99999974E-6 : f32
    %115 = vector.broadcast %cst_47 : f32 to vector<1x4x1xf32>
    %116 = arith.addf %108, %115 : vector<1x4x1xf32>
    %117 = math.rsqrt %116 : vector<1x4x1xf32>
    %118 = arith.mulf %117, %111 : vector<1x4x1xf32>
    %119 = vector.broadcast %118 : vector<1x4x1xf32> to vector<2x4x256xf32>
    %120 = arith.mulf %101, %119 : vector<2x4x256xf32>
    %121 = vector.broadcast %114 : vector<1x4x1xf32> to vector<2x4x256xf32>
    %122 = arith.addf %120, %121 : vector<2x4x256xf32>
    %123 = vector.shape_cast %122 : vector<2x4x256xf32> to vector<8x256xf32>
    %c17_i32_48 = arith.constant 17 : i32
    %124 = tpu.dynamic_rotate %123 by %c17_i32_48 dim 1 : vector<8x256xf32>, i32 -> vector<8x256xf32>
    %c9 = arith.constant 9 : index
    %c0_49 = arith.constant 0 : index
    %c0_50 = arith.constant 0 : index
    %125 = vector.load %arg2[%c9, %c0_49, %c0_50] : memref<18x8x1xf32, #tpu.memory_space<vmem>>, vector<1x8x1xf32>
    %126 = vector.shape_cast %125 : vector<1x8x1xf32> to vector<8x1xf32>
    %127 = vector.broadcast %126 : vector<8x1xf32> to vector<8x256xf32>
    %128 = arith.mulf %124, %127 : vector<8x256xf32>
    %c0_51 = arith.constant 0 : index
    %c0_52 = arith.constant 0 : index
    %129 = vector.load %arg1[%c0_51, %c0_52] : memref<9x256xf32, #tpu.memory_space<vmem>>, vector<1x256xf32>
    %130 = vector.shape_cast %129 : vector<1x256xf32> to vector<256xf32>
    %131 = vector.shape_cast %130 : vector<256xf32> to vector<1x256xf32>
    %132 = vector.broadcast %131 : vector<1x256xf32> to vector<8x256xf32>
    %133 = arith.mulf %128, %132 : vector<8x256xf32>
    %c16_i32_53 = arith.constant 16 : i32
    %134 = tpu.dynamic_rotate %123 by %c16_i32_53 dim 1 : vector<8x256xf32>, i32 -> vector<8x256xf32>
    %c10 = arith.constant 10 : index
    %c0_54 = arith.constant 0 : index
    %c0_55 = arith.constant 0 : index
    %135 = vector.load %arg2[%c10, %c0_54, %c0_55] : memref<18x8x1xf32, #tpu.memory_space<vmem>>, vector<1x8x1xf32>
    %136 = vector.shape_cast %135 : vector<1x8x1xf32> to vector<8x1xf32>
    %137 = vector.broadcast %136 : vector<8x1xf32> to vector<8x256xf32>
    %138 = arith.mulf %134, %137 : vector<8x256xf32>
    %c1_56 = arith.constant 1 : index
    %c0_57 = arith.constant 0 : index
    %139 = vector.load %arg1[%c1_56, %c0_57] : memref<9x256xf32, #tpu.memory_space<vmem>>, vector<1x256xf32>
    %140 = vector.shape_cast %139 : vector<1x256xf32> to vector<256xf32>
    %141 = vector.shape_cast %140 : vector<256xf32> to vector<1x256xf32>
    %142 = vector.broadcast %141 : vector<1x256xf32> to vector<8x256xf32>
    %143 = arith.mulf %138, %142 : vector<8x256xf32>
    %144 = arith.addf %133, %143 : vector<8x256xf32>
    %c15_i32_58 = arith.constant 15 : i32
    %145 = tpu.dynamic_rotate %123 by %c15_i32_58 dim 1 : vector<8x256xf32>, i32 -> vector<8x256xf32>
    %c11 = arith.constant 11 : index
    %c0_59 = arith.constant 0 : index
    %c0_60 = arith.constant 0 : index
    %146 = vector.load %arg2[%c11, %c0_59, %c0_60] : memref<18x8x1xf32, #tpu.memory_space<vmem>>, vector<1x8x1xf32>
    %147 = vector.shape_cast %146 : vector<1x8x1xf32> to vector<8x1xf32>
    %148 = vector.broadcast %147 : vector<8x1xf32> to vector<8x256xf32>
    %149 = arith.mulf %145, %148 : vector<8x256xf32>
    %c2_61 = arith.constant 2 : index
    %c0_62 = arith.constant 0 : index
    %150 = vector.load %arg1[%c2_61, %c0_62] : memref<9x256xf32, #tpu.memory_space<vmem>>, vector<1x256xf32>
    %151 = vector.shape_cast %150 : vector<1x256xf32> to vector<256xf32>
    %152 = vector.shape_cast %151 : vector<256xf32> to vector<1x256xf32>
    %153 = vector.broadcast %152 : vector<1x256xf32> to vector<8x256xf32>
    %154 = arith.mulf %149, %153 : vector<8x256xf32>
    %155 = arith.addf %144, %154 : vector<8x256xf32>
    %c1_i32_63 = arith.constant 1 : i32
    %156 = tpu.dynamic_rotate %123 by %c1_i32_63 dim 1 : vector<8x256xf32>, i32 -> vector<8x256xf32>
    %c12 = arith.constant 12 : index
    %c0_64 = arith.constant 0 : index
    %c0_65 = arith.constant 0 : index
    %157 = vector.load %arg2[%c12, %c0_64, %c0_65] : memref<18x8x1xf32, #tpu.memory_space<vmem>>, vector<1x8x1xf32>
    %158 = vector.shape_cast %157 : vector<1x8x1xf32> to vector<8x1xf32>
    %159 = vector.broadcast %158 : vector<8x1xf32> to vector<8x256xf32>
    %160 = arith.mulf %156, %159 : vector<8x256xf32>
    %c3_66 = arith.constant 3 : index
    %c0_67 = arith.constant 0 : index
    %161 = vector.load %arg1[%c3_66, %c0_67] : memref<9x256xf32, #tpu.memory_space<vmem>>, vector<1x256xf32>
    %162 = vector.shape_cast %161 : vector<1x256xf32> to vector<256xf32>
    %163 = vector.shape_cast %162 : vector<256xf32> to vector<1x256xf32>
    %164 = vector.broadcast %163 : vector<1x256xf32> to vector<8x256xf32>
    %165 = arith.mulf %160, %164 : vector<8x256xf32>
    %166 = arith.addf %155, %165 : vector<8x256xf32>
    %c13 = arith.constant 13 : index
    %c0_68 = arith.constant 0 : index
    %c0_69 = arith.constant 0 : index
    %167 = vector.load %arg2[%c13, %c0_68, %c0_69] : memref<18x8x1xf32, #tpu.memory_space<vmem>>, vector<1x8x1xf32>
    %168 = vector.shape_cast %167 : vector<1x8x1xf32> to vector<8x1xf32>
    %169 = vector.broadcast %168 : vector<8x1xf32> to vector<8x256xf32>
    %170 = arith.mulf %123, %169 : vector<8x256xf32>
    %171 = arith.addf %166, %170 : vector<8x256xf32>
    %c255_i32_70 = arith.constant 255 : i32
    %172 = tpu.dynamic_rotate %123 by %c255_i32_70 dim 1 : vector<8x256xf32>, i32 -> vector<8x256xf32>
    %c14 = arith.constant 14 : index
    %c0_71 = arith.constant 0 : index
    %c0_72 = arith.constant 0 : index
    %173 = vector.load %arg2[%c14, %c0_71, %c0_72] : memref<18x8x1xf32, #tpu.memory_space<vmem>>, vector<1x8x1xf32>
    %174 = vector.shape_cast %173 : vector<1x8x1xf32> to vector<8x1xf32>
    %175 = vector.broadcast %174 : vector<8x1xf32> to vector<8x256xf32>
    %176 = arith.mulf %172, %175 : vector<8x256xf32>
    %c5_73 = arith.constant 5 : index
    %c0_74 = arith.constant 0 : index
    %177 = vector.load %arg1[%c5_73, %c0_74] : memref<9x256xf32, #tpu.memory_space<vmem>>, vector<1x256xf32>
    %178 = vector.shape_cast %177 : vector<1x256xf32> to vector<256xf32>
    %179 = vector.shape_cast %178 : vector<256xf32> to vector<1x256xf32>
    %180 = vector.broadcast %179 : vector<1x256xf32> to vector<8x256xf32>
    %181 = arith.mulf %176, %180 : vector<8x256xf32>
    %182 = arith.addf %171, %181 : vector<8x256xf32>
    %c241_i32_75 = arith.constant 241 : i32
    %183 = tpu.dynamic_rotate %123 by %c241_i32_75 dim 1 : vector<8x256xf32>, i32 -> vector<8x256xf32>
    %c15 = arith.constant 15 : index
    %c0_76 = arith.constant 0 : index
    %c0_77 = arith.constant 0 : index
    %184 = vector.load %arg2[%c15, %c0_76, %c0_77] : memref<18x8x1xf32, #tpu.memory_space<vmem>>, vector<1x8x1xf32>
    %185 = vector.shape_cast %184 : vector<1x8x1xf32> to vector<8x1xf32>
    %186 = vector.broadcast %185 : vector<8x1xf32> to vector<8x256xf32>
    %187 = arith.mulf %183, %186 : vector<8x256xf32>
    %c6_78 = arith.constant 6 : index
    %c0_79 = arith.constant 0 : index
    %188 = vector.load %arg1[%c6_78, %c0_79] : memref<9x256xf32, #tpu.memory_space<vmem>>, vector<1x256xf32>
    %189 = vector.shape_cast %188 : vector<1x256xf32> to vector<256xf32>
    %190 = vector.shape_cast %189 : vector<256xf32> to vector<1x256xf32>
    %191 = vector.broadcast %190 : vector<1x256xf32> to vector<8x256xf32>
    %192 = arith.mulf %187, %191 : vector<8x256xf32>
    %193 = arith.addf %182, %192 : vector<8x256xf32>
    %c240_i32_80 = arith.constant 240 : i32
    %194 = tpu.dynamic_rotate %123 by %c240_i32_80 dim 1 : vector<8x256xf32>, i32 -> vector<8x256xf32>
    %c16 = arith.constant 16 : index
    %c0_81 = arith.constant 0 : index
    %c0_82 = arith.constant 0 : index
    %195 = vector.load %arg2[%c16, %c0_81, %c0_82] : memref<18x8x1xf32, #tpu.memory_space<vmem>>, vector<1x8x1xf32>
    %196 = vector.shape_cast %195 : vector<1x8x1xf32> to vector<8x1xf32>
    %197 = vector.broadcast %196 : vector<8x1xf32> to vector<8x256xf32>
    %198 = arith.mulf %194, %197 : vector<8x256xf32>
    %c7_83 = arith.constant 7 : index
    %c0_84 = arith.constant 0 : index
    %199 = vector.load %arg1[%c7_83, %c0_84] : memref<9x256xf32, #tpu.memory_space<vmem>>, vector<1x256xf32>
    %200 = vector.shape_cast %199 : vector<1x256xf32> to vector<256xf32>
    %201 = vector.shape_cast %200 : vector<256xf32> to vector<1x256xf32>
    %202 = vector.broadcast %201 : vector<1x256xf32> to vector<8x256xf32>
    %203 = arith.mulf %198, %202 : vector<8x256xf32>
    %204 = arith.addf %193, %203 : vector<8x256xf32>
    %c239_i32_85 = arith.constant 239 : i32
    %205 = tpu.dynamic_rotate %123 by %c239_i32_85 dim 1 : vector<8x256xf32>, i32 -> vector<8x256xf32>
    %c17 = arith.constant 17 : index
    %c0_86 = arith.constant 0 : index
    %c0_87 = arith.constant 0 : index
    %206 = vector.load %arg2[%c17, %c0_86, %c0_87] : memref<18x8x1xf32, #tpu.memory_space<vmem>>, vector<1x8x1xf32>
    %207 = vector.shape_cast %206 : vector<1x8x1xf32> to vector<8x1xf32>
    %208 = vector.broadcast %207 : vector<8x1xf32> to vector<8x256xf32>
    %209 = arith.mulf %205, %208 : vector<8x256xf32>
    %c8_88 = arith.constant 8 : index
    %c0_89 = arith.constant 0 : index
    %210 = vector.load %arg1[%c8_88, %c0_89] : memref<9x256xf32, #tpu.memory_space<vmem>>, vector<1x256xf32>
    %211 = vector.shape_cast %210 : vector<1x256xf32> to vector<256xf32>
    %212 = vector.shape_cast %211 : vector<256xf32> to vector<1x256xf32>
    %213 = vector.broadcast %212 : vector<1x256xf32> to vector<8x256xf32>
    %214 = arith.mulf %209, %213 : vector<8x256xf32>
    %215 = arith.addf %204, %214 : vector<8x256xf32>
    %216 = vector.shape_cast %215 : vector<8x256xf32> to vector<2x4x256xf32>
    %217 = vector.extract_strided_slice %216 {offsets = [0, 0, 0], sizes = [2, 1, 256], strides = [1, 1, 1]} : vector<2x4x256xf32> to vector<2x1x256xf32>
    %c0_90 = arith.constant 0 : index
    %c0_91 = arith.constant 0 : index
    %c0_92 = arith.constant 0 : index
    %218 = vector.load %arg3[%c0_90, %c0_91, %c0_92] : memref<4x16x1xf32, #tpu.memory_space<vmem>>, vector<1x16x1xf32>
    %219 = vector.shape_cast %218 : vector<1x16x1xf32> to vector<16x1xf32>
    %220 = vector.shape_cast %219 : vector<16x1xf32> to vector<1x16x1xf32>
    %221 = vector.broadcast %217 : vector<2x1x256xf32> to vector<2x16x256xf32>
    %222 = vector.broadcast %220 : vector<1x16x1xf32> to vector<2x16x256xf32>
    %223 = arith.mulf %221, %222 : vector<2x16x256xf32>
    %224 = vector.extract_strided_slice %216 {offsets = [0, 1, 0], sizes = [2, 1, 256], strides = [1, 1, 1]} : vector<2x4x256xf32> to vector<2x1x256xf32>
    %c1_93 = arith.constant 1 : index
    %c0_94 = arith.constant 0 : index
    %c0_95 = arith.constant 0 : index
    %225 = vector.load %arg3[%c1_93, %c0_94, %c0_95] : memref<4x16x1xf32, #tpu.memory_space<vmem>>, vector<1x16x1xf32>
    %226 = vector.shape_cast %225 : vector<1x16x1xf32> to vector<16x1xf32>
    %227 = vector.shape_cast %226 : vector<16x1xf32> to vector<1x16x1xf32>
    %228 = vector.broadcast %224 : vector<2x1x256xf32> to vector<2x16x256xf32>
    %229 = vector.broadcast %227 : vector<1x16x1xf32> to vector<2x16x256xf32>
    %230 = arith.mulf %228, %229 : vector<2x16x256xf32>
    %231 = arith.addf %223, %230 : vector<2x16x256xf32>
    %232 = vector.extract_strided_slice %216 {offsets = [0, 2, 0], sizes = [2, 1, 256], strides = [1, 1, 1]} : vector<2x4x256xf32> to vector<2x1x256xf32>
    %c2_96 = arith.constant 2 : index
    %c0_97 = arith.constant 0 : index
    %c0_98 = arith.constant 0 : index
    %233 = vector.load %arg3[%c2_96, %c0_97, %c0_98] : memref<4x16x1xf32, #tpu.memory_space<vmem>>, vector<1x16x1xf32>
    %234 = vector.shape_cast %233 : vector<1x16x1xf32> to vector<16x1xf32>
    %235 = vector.shape_cast %234 : vector<16x1xf32> to vector<1x16x1xf32>
    %236 = vector.broadcast %232 : vector<2x1x256xf32> to vector<2x16x256xf32>
    %237 = vector.broadcast %235 : vector<1x16x1xf32> to vector<2x16x256xf32>
    %238 = arith.mulf %236, %237 : vector<2x16x256xf32>
    %239 = arith.addf %231, %238 : vector<2x16x256xf32>
    %240 = vector.extract_strided_slice %216 {offsets = [0, 3, 0], sizes = [2, 1, 256], strides = [1, 1, 1]} : vector<2x4x256xf32> to vector<2x1x256xf32>
    %c3_99 = arith.constant 3 : index
    %c0_100 = arith.constant 0 : index
    %c0_101 = arith.constant 0 : index
    %241 = vector.load %arg3[%c3_99, %c0_100, %c0_101] : memref<4x16x1xf32, #tpu.memory_space<vmem>>, vector<1x16x1xf32>
    %242 = vector.shape_cast %241 : vector<1x16x1xf32> to vector<16x1xf32>
    %243 = vector.shape_cast %242 : vector<16x1xf32> to vector<1x16x1xf32>
    %244 = vector.broadcast %240 : vector<2x1x256xf32> to vector<2x16x256xf32>
    %245 = vector.broadcast %243 : vector<1x16x1xf32> to vector<2x16x256xf32>
    %246 = arith.mulf %244, %245 : vector<2x16x256xf32>
    %247 = arith.addf %239, %246 : vector<2x16x256xf32>
    %cst_102 = arith.constant dense<0.000000e+00> : vector<2x16xf32>
    %248 = vector.multi_reduction <add>, %247, %cst_102 [2] : vector<2x16x256xf32> to vector<2x16xf32>
    %249 = vector.shape_cast %248 : vector<2x16xf32> to vector<2x16x1xf32>
    %cst_103 = arith.constant dense<0.000000e+00> : vector<16x1xf32>
    %250 = vector.multi_reduction <add>, %249, %cst_103 [0] : vector<2x16x1xf32> to vector<16x1xf32>
    %251 = vector.shape_cast %250 : vector<16x1xf32> to vector<1x16x1xf32>
    %cst_104 = arith.constant 0.001953125 : f32
    %252 = vector.broadcast %cst_104 : f32 to vector<1x16x1xf32>
    %253 = arith.mulf %251, %252 : vector<1x16x1xf32>
    %254 = vector.broadcast %253 : vector<1x16x1xf32> to vector<2x16x256xf32>
    %255 = arith.subf %247, %254 : vector<2x16x256xf32>
    %256 = arith.mulf %255, %255 : vector<2x16x256xf32>
    %cst_105 = arith.constant dense<0.000000e+00> : vector<2x16xf32>
    %257 = vector.multi_reduction <add>, %256, %cst_105 [2] : vector<2x16x256xf32> to vector<2x16xf32>
    %258 = vector.shape_cast %257 : vector<2x16xf32> to vector<2x16x1xf32>
    %cst_106 = arith.constant dense<0.000000e+00> : vector<16x1xf32>
    %259 = vector.multi_reduction <add>, %258, %cst_106 [0] : vector<2x16x1xf32> to vector<16x1xf32>
    %260 = vector.shape_cast %259 : vector<16x1xf32> to vector<1x16x1xf32>
    %cst_107 = arith.constant 0.001953125 : f32
    %261 = vector.broadcast %cst_107 : f32 to vector<1x16x1xf32>
    %262 = arith.mulf %260, %261 : vector<1x16x1xf32>
    %c0_108 = arith.constant 0 : index
    %c0_109 = arith.constant 0 : index
    %c0_110 = arith.constant 0 : index
    %263 = vector.load %arg5[%c0_108, %c0_109, %c0_110] : memref<2x16x1xf32, #tpu.memory_space<vmem>>, vector<1x16x1xf32>
    %264 = vector.shape_cast %263 : vector<1x16x1xf32> to vector<16x1xf32>
    %265 = vector.shape_cast %264 : vector<16x1xf32> to vector<1x16x1xf32>
    %c1_111 = arith.constant 1 : index
    %c0_112 = arith.constant 0 : index
    %c0_113 = arith.constant 0 : index
    %266 = vector.load %arg5[%c1_111, %c0_112, %c0_113] : memref<2x16x1xf32, #tpu.memory_space<vmem>>, vector<1x16x1xf32>
    %267 = vector.shape_cast %266 : vector<1x16x1xf32> to vector<16x1xf32>
    %268 = vector.shape_cast %267 : vector<16x1xf32> to vector<1x16x1xf32>
    %cst_114 = arith.constant 9.99999974E-6 : f32
    %269 = vector.broadcast %cst_114 : f32 to vector<1x16x1xf32>
    %270 = arith.addf %262, %269 : vector<1x16x1xf32>
    %271 = math.rsqrt %270 : vector<1x16x1xf32>
    %272 = arith.mulf %271, %265 : vector<1x16x1xf32>
    %273 = vector.broadcast %272 : vector<1x16x1xf32> to vector<2x16x256xf32>
    %274 = arith.mulf %255, %273 : vector<2x16x256xf32>
    %275 = vector.broadcast %268 : vector<1x16x1xf32> to vector<2x16x256xf32>
    %276 = arith.addf %274, %275 : vector<2x16x256xf32>
    %cst_115 = arith.constant 0.000000e+00 : f32
    %277 = vector.broadcast %cst_115 : f32 to vector<2x16x256xf32>
    %278 = arith.maximumf %276, %277 : vector<2x16x256xf32>
    %c0_116 = arith.constant 0 : index
    %c0_117 = arith.constant 0 : index
    %c0_118 = arith.constant 0 : index
    %279 = vector.load %arg6[%c0_116, %c0_117, %c0_118] : memref<2x16x256xf32, #tpu.memory_space<vmem>>, vector<2x16x256xf32>
    tpu.vector_store %arg6[%c0_116, %c0_117, %c0_118], %278 {strides = array<i32>} : memref<2x16x256xf32, #tpu.memory_space<vmem>>, vector<2x16x256xf32>,
    return
  }
}

</mosaic_0001>

<bundles_post_ra>
// kernel: tpu_custom_call.1
= control target key start
LH: loop header
LB: loop body
LE: loop exit
PB: predicated region body
PF: predicated region fallthrough
CT: control target
= control target key end

     0   :  { %v1039_v2 = vmov 0   ;;  %s1523_s0 = inlined_call_operand.vmem [shape: f32[8,256], index: 0, kind: input, shape index: {}]   ;;  %s1524_s1 = inlined_call_operand.vmem [shape: f32[9,256], index: 1, kind: input, shape index: {}]   ;;  %s1525_s2 = inlined_call_operand.vmem [shape: f32[18,8,1], index: 2, kind: input, shape index: {}]   ;;  %s1526_s3 = inlined_call_operand.vmem [shape: f32[4,16,1], index: 3, kind: input, shape index: {}]   ;;  %s1527_s4 = inlined_call_operand.vmem [shape: f32[2,4,1], index: 4, kind: input, shape index: {}]   ;;  %s1528_s5 = inlined_call_operand.vmem [shape: f32[2,16,1], index: 5, kind: input, shape index: {}]   ;;  %s1529_s6 = inlined_call_operand.hbm [shape: f32[2,16,256], index: 6, kind: output, shape index: {}]  }
   0x1   :  { %v963_v0 = vld [vmem:[%s1525_s2 + $0x10] sm:$0xff]  ;;  %v35_v1 = vld [vmem:[%s1525_s2] sm:$0xff]  ;;  %1010 = vset.pattern.permute.xlu1 %v1039_v2  ;;  %1009 = vset.pattern.permute.xlu0 %v1039_v2  ;;  %v961_v3 = vld [vmem:[%s1525_s2 + $0x8] sm:$0xff] }
   0x2   :  { %101 = vperm.xlu1 %1010, %v963_v0   ;;  %38 = vperm.xlu0 %1009, %v35_v1   ;;  %v1099_v4 = vld [vmem:[%s1523_s0] sm:$0xff] }
   0x3   :  { %11 = vsyncpa [#allocation3], 0  ;;  %s1040_s29 = smov 17   ;;  %v1106_v5 = vld [vmem:[%s1523_s0 + $0x8] sm:$0xff]  ;;  %s1041_s8 = smov 16   ;;  %v965_v6 = vld [vmem:[%s1525_s2 + $0x18] sm:$0xff]  ;;  %v30_v20 = vlaneseq }
   0x4   :  { %s1042_s11 = smov 15   ;;  %s1043_s0 = smov 1   ;;  %v967_v7 = vld [vmem:[%s1525_s2 + $0x20] sm:$0xff]  ;;  %v968_v8 = vld [vmem:[%s1525_s2 + $0x28] sm:$0xff]  ;;  %v970_v9 = vld [vmem:[%s1525_s2 + $0x30] sm:$0xff]  ;;  %vm309_vm8 = vcmask 1043456  }
   0x5   :  { %s1044_s18 = smov 127   ;;  %v972_v10 = vld [vmem:[%s1525_s2 + $0x38] sm:$0xff]  ;;  %s1045_s21 = smov 113   ;;  %v974_v11 = vld [vmem:[%s1525_s2 + $0x40] sm:$0xff]  ;;  %v1156_v23 = vand.u32 127, %v30_v20  ;;  %v1158_v24 = vshrl.u32 %v30_v20, 7 }
   0x6   :  { %68 = vperm.xlu0 %1009, %v961_v3   ;;  %26 = vrot.lane.b32.xlu1 %v1099_v4, %s1040_s29  ;;  %s1046_s24 = smov 112   ;;  %s1047_s25 = smov 111   ;;  %v962_v27 = vld [vmem:[%s1524_s1 + $0x1] ss:$8 sm:$0x3] }
   0x7   :  { %vm61_vm0 = vcmp.lt.s32.totalorder %v1156_v23, 16  ;;  %vm32_vm1 = vcmp.lt.s32.totalorder %v1156_v23, 17  ;;  %v1166_v28 = vsub.s32 0, %v1158_v24  ;;  %v1171_v31 = vsub.s32 1, %v1158_v24 }
   0x8   :  { %vm94_vm2 = vcmp.lt.s32.totalorder %v1156_v23, 15  ;;  %v43_v34 = vld [vmem:[%s1524_s1] ss:$8 sm:$0x3]  ;;  %vm127_vm3 = vcmp.lt.s32.totalorder %v1156_v23, 1  ;;  %vm171_vm4 = vcmp.lt.s32.totalorder %v1156_v23, 127 }
   0x9   :  { %v1182_v35 = vrot.slane %v962_v27, %v1166_v28  ;;  %v1189_v38 = vrot.slane %v962_v27, %v1171_v31  ;;  %v964_v41 = vld [vmem:[%s1524_s1 + $0x2] ss:$8 sm:$0x3]  ;;  %v1200_v46 = vrot.slane %v43_v34, %v1166_v28  ;;  %v1203_v47 = vrot.slane %v43_v34, %v1171_v31  ;;  %v966_v50 = vld [vmem:[%s1524_s1 + $0x3] ss:$8 sm:$0x3] }
   0xa   :  { %28 = vrot.lane.b32.xlu0 %v1106_v5, %s1040_s29  ;;  %57 = vrot.lane.b32.xlu1 %v1099_v4, %s1041_s8  ;;  %v1213_v53 = vrot.slane %v964_v41, %v1166_v28  ;;  %v1216_v54 = vrot.slane %v964_v41, %v1171_v31  ;;  %v1221_v61 = vrot.slane %v966_v50, %v1166_v28  ;;  %vm204_vm5 = vcmp.lt.s32.totalorder %v1156_v23, 113 }
   0xb   :  { %v1224_v62 = vrot.slane %v966_v50, %v1171_v31  ;;  %vm237_vm6 = vcmp.lt.s32.totalorder %v1156_v23, 112  ;;  %vm270_vm7 = vcmp.lt.s32.totalorder %v1156_v23, 111  ;;  %v713_v23 = vsub.s32 6, %v1158_v24 }
   0xe   :  { %59 = vrot.lane.b32.xlu0 %v1106_v5, %s1041_s8  ;;  %134 = vperm.xlu1 %1010, %v965_v6  }
  0x12   :  { %90 = vrot.lane.b32.xlu0 %v1099_v4, %s1042_s11  ;;  %92 = vrot.lane.b32.xlu1 %v1106_v5, %s1042_s11 }
  0x16   :  { %123 = vrot.lane.b32.xlu0 %v1099_v4, %s1043_s0  ;;  %125 = vrot.lane.b32.xlu1 %v1106_v5, %s1043_s0 }
  0x1a   :  { %160 = vperm.xlu0 %1009, %v967_v7   ;;  %178 = vperm.xlu1 %1010, %v968_v8   ;;  %v969_v7 = vld [vmem:[%s1524_s1 + $0x5] ss:$8 sm:$0x3] }
  0x1e   :  { %211 = vperm.xlu0 %1009, %v970_v9   ;;  %167 = vrot.lane.b32.xlu1 %v1099_v4, %s1044_s18 }
  0x22   :  { %169 = vrot.lane.b32.xlu0 %v1106_v5, %s1044_s18  ;;  %244 = vperm.xlu1 %1010, %v972_v10  }
  0x26   :  { %200 = vrot.lane.b32.xlu0 %v1099_v4, %s1045_s21  ;;  %202 = vrot.lane.b32.xlu1 %v1106_v5, %s1045_s21 }
  0x2a   :  { %277 = vperm.xlu0 %1009, %v974_v11   ;;  %233 = vrot.lane.b32.xlu1 %v1099_v4, %s1046_s24 }
  0x2e   :  { %235 = vrot.lane.b32.xlu0 %v1106_v5, %s1046_s24  ;;  %266 = vrot.lane.b32.xlu1 %v1099_v4, %s1047_s25 }
  0x32   :  { %268 = vrot.lane.b32.xlu0 %v1106_v5, %s1047_s25 }
  0x7d   :  { %v102_v12 = vpop.permute.xlu1 %101  ;;  %v39_v13 = vpop.permute.xlu0 %38 }
  0x81   :  { %v69_v14 = vpop.permute.xlu0 %68  ;;  %v27_v15 = vpop.permute.xlu1 %26 }
  0x85   :  { %v29_v16 = vpop.permute.xlu0 %28  ;;  %v58_v17 = vpop.permute.xlu1 %57 }
  0x86   :  { %v33_v36 = vsel %vm32_vm1, %v27_v15, %v29_v16  ;;  %v34_v37 = vsel %vm32_vm1, %v29_v16, %v27_v15  ;;  %v971_v16 = vld [vmem:[%s1524_s1 + $0x6] ss:$8 sm:$0x3] }
  0x87   :  { %v41_v48 = vmul.f32 %v39_v13, %v34_v37  ;;  %v42_v49 = vmul.f32 %v39_v13, %v33_v36  ;;  %v1255_v27 = vrot.slane %v971_v16, %v1166_v28  ;;  %v1265_v41 = vrot.slane %v971_v16, %v1171_v31 }
  0x89   :  { %v60_v18 = vpop.permute.xlu0 %59  ;;  %v135_v19 = vpop.permute.xlu1 %134  ;;  %v55_v1 = vmul.f32 %v1200_v46, %v41_v48  ;;  %v56_v2 = vmul.f32 %v1203_v47, %v42_v49 }
  0x8a   :  { %v62_v32 = vsel %vm61_vm0, %v58_v17, %v60_v18  ;;  %v63_v33 = vsel %vm61_vm0, %v60_v18, %v58_v17  ;;  %v1245_v17 = vrot.slane %v969_v7, %v1166_v28 }
  0x8b   :  { %v71_v39 = vmul.f32 %v69_v14, %v63_v33  ;;  %v72_v40 = vmul.f32 %v69_v14, %v62_v32  ;;  %v973_v33 = vld [vmem:[%s1524_s1 + $0x7] ss:$8 sm:$0x3] }
  0x8d   :  { %v91_v21 = vpop.permute.xlu0 %90  ;;  %v93_v22 = vpop.permute.xlu1 %92  ;;  %v86_v57 = vmul.f32 %v1182_v35, %v71_v39  ;;  %v87_v58 = vmul.f32 %v1189_v38, %v72_v40 }
  0x8e   :  { %v95_v42 = vsel %vm94_vm2, %v91_v21, %v93_v22  ;;  %v96_v43 = vsel %vm94_vm2, %v93_v22, %v91_v21  ;;  %v1252_v22 = vrot.slane %v969_v7, %v1171_v31 }
  0x8f   :  { %v104_v55 = vmul.f32 %v102_v12, %v96_v43  ;;  %v105_v56 = vmul.f32 %v102_v12, %v95_v42  ;;  %v88_v8 = vadd.f32 %v86_v57, %v55_v1  ;;  %v89_v9 = vadd.f32 %v87_v58, %v56_v2 }
  0x90   :  { %v1269_v43 = vrot.slane %v973_v33, %v1166_v28 }
  0x91   :  { %v124_v25 = vpop.permute.xlu0 %123  ;;  %v126_v26 = vpop.permute.xlu1 %125  ;;  %v119_v3 = vmul.f32 %v1213_v53, %v104_v55  ;;  %v120_v6 = vmul.f32 %v1216_v54, %v105_v56 }
  0x92   :  { %v128_v51 = vsel %vm127_vm3, %v124_v25, %v126_v26  ;;  %v129_v52 = vsel %vm127_vm3, %v126_v26, %v124_v25 }
  0x93   :  { %v137_v63 = vmul.f32 %v135_v19, %v129_v52  ;;  %v138_v0 = vmul.f32 %v135_v19, %v128_v51  ;;  %v121_v18 = vadd.f32 %v119_v3, %v88_v8  ;;  %v122_v19 = vadd.f32 %v120_v6, %v89_v9 }
  0x95   :  { %v1168_v29 = vpop.permute.xlu0 %160  ;;  %v179_v30 = vpop.permute.xlu1 %178  ;;  %v152_v12 = vmul.f32 %v1221_v61, %v137_v63  ;;  %v153_v13 = vmul.f32 %v1224_v62, %v138_v0 }
  0x96   :  { %v163_v39 = vmul.f32 %v1168_v29, %v1099_v4  ;;  %v164_v40 = vmul.f32 %v1168_v29, %v1106_v5  ;;  %v1274_v4 = vrot.slane %v973_v33, %v1171_v31  ;;  %v975_v5 = vld [vmem:[%s1524_s1 + $0x10] ss:$8 sm:$0x3] }
  0x97   :  { %v154_v36 = vadd.f32 %v152_v12, %v121_v18  ;;  %v155_v37 = vadd.f32 %v153_v13, %v122_v19  ;;  %v1290_v63 = vrot.slane %v975_v5, %v1171_v31 }
  0x99   :  { %v212_v44 = vpop.permute.xlu0 %211  ;;  %v168_v45 = vpop.permute.xlu1 %167  ;;  %v165_v29 = vadd.f32 %v163_v39, %v154_v36  ;;  %v1048_v39 = vmov 839922192  }
  0x9d   :  { %v170_v59 = vpop.permute.xlu0 %169  ;;  %v245_v60 = vpop.permute.xlu1 %244 }
  0x9e   :  { %v172_v14 = vsel %vm171_vm4, %v168_v45, %v170_v59  ;;  %v173_v15 = vsel %vm171_vm4, %v170_v59, %v168_v45  ;;  %v1287_v59 = vrot.slane %v975_v5, %v1166_v28 }
  0x9f   :  { %v181_v25 = vmul.f32 %v179_v30, %v172_v14  ;;  %v182_v26 = vmul.f32 %v179_v30, %v173_v15 }
  0xa1   :  { %v201_v10 = vpop.permute.xlu0 %200  ;;  %v203_v11 = vpop.permute.xlu1 %202  ;;  %v196_v45 = vmul.f32 %v1245_v17, %v181_v25  ;;  %v197_v48 = vmul.f32 %v1252_v22, %v182_v26 }
  0xa2   :  { %v205_v20 = vsel %vm204_vm5, %v201_v10, %v203_v11  ;;  %v206_v21 = vsel %vm204_vm5, %v203_v11, %v201_v10 }
  0xa3   :  { %v214_v30 = vmul.f32 %v212_v44, %v205_v20  ;;  %v215_v42 = vmul.f32 %v212_v44, %v206_v21  ;;  %v166_v44 = vadd.f32 %v164_v40, %v155_v37  ;;  %v198_v0 = vadd.f32 %v196_v45, %v165_v29 }
  0xa4   :  { %v326_v40 = vunpack.c.l.s4 %v1048_v39  ;;  %v583_v39 = vld [vmem:[%s1526_s3] sm:$0xff] }
  0xa5   :  { %v278_v32 = vpop.permute.xlu0 %277  ;;  %v234_v34 = vpop.permute.xlu1 %233  ;;  %v229_v52 = vmul.f32 %v1255_v27, %v214_v30  ;;  %v230_v55 = vmul.f32 %v1265_v41, %v215_v42  ;;  %v199_v1 = vadd.f32 %v197_v48, %v166_v44 }
  0xa6   :  { %v327_v30 = vunpack.c.0.s8 %v326_v40 }
  0xa7   :  { %v231_v8 = vadd.f32 %v229_v52, %v198_v0  ;;  %v232_v9 = vadd.f32 %v230_v55, %v199_v1 }
  0xa8   :  { %v1307_v5 = vsub.s32 %v327_v30, %v1158_v24 }
  0xa9   :  { %v236_v49 = vpop.permute.xlu0 %235  ;;  %v267_v58 = vpop.permute.xlu1 %266 }
  0xaa   :  { %v238_v50 = vsel %vm237_vm6, %v234_v34, %v236_v49  ;;  %v239_v51 = vsel %vm237_vm6, %v236_v49, %v234_v34 }
  0xab   :  { %v247_v56 = vmul.f32 %v245_v60, %v238_v50  ;;  %v248_v57 = vmul.f32 %v245_v60, %v239_v51 }
  0xad   :  { %v262_v2 = vmul.f32 %v1269_v43, %v247_v56  ;;  %v263_v3 = vmul.f32 %v1274_v4, %v248_v57  ;;  %v269_v6 = vpop.permute.xlu0 %268 }
  0xae   :  { %v271_v7 = vsel %vm270_vm7, %v267_v58, %v269_v6  ;;  %v272_v60 = vsel %vm270_vm7, %v269_v6, %v267_v58 }
  0xaf   :  { %v280_v10 = vmul.f32 %v278_v32, %v271_v7  ;;  %v281_v11 = vmul.f32 %v278_v32, %v272_v60  ;;  %v264_v12 = vadd.f32 %v262_v2, %v231_v8  ;;  %v265_v13 = vadd.f32 %v263_v3, %v232_v9  ;;  %v978_v60 = vld [vmem:[%s1527_s4 + $0x4] sm:$0xf]  ;;  %v979_v8 = vld [vmem:[%s1525_s2 + $0x48] sm:$0xff]  ;;  %v981_v9 = vld [vmem:[%s1525_s2 + $0x58] sm:$0xff] }
  0xb1   :  { %v295_v14 = vmul.f32 %v1287_v59, %v280_v10  ;;  %v296_v15 = vmul.f32 %v1290_v63, %v281_v11  ;;  %v983_v10 = vld [vmem:[%s1525_s2 + $0x68] sm:$0xff]  ;;  %v985_v11 = vld [vmem:[%s1525_s2 + $0x78] sm:$0xff] }
  0xb3   :  { %v298_v16 = vadd.f32 %v296_v15, %v265_v13  ;;  %v297_v18 = vadd.f32 %v295_v14, %v264_v12  ;;  %v987_v12 = vld [vmem:[%s1525_s2 + $0x88] sm:$0xff] }
  0xb4   :  { %v584_v13 = vld [vmem:[%s1526_s3 + $0x8] sm:$0xff] }
  0xb5   :  { %v302_v19 = vcombine.high %v297_v18, %v298_v16  ;;  %v977_v20 = vcombine.high %v298_v16, %v298_v16  ;;  %v301_v21 = vcombine.low %v297_v18, %v298_v16  ;;  %v976_v25 = vcombine.low %v298_v16, %v298_v16 }
  0xb7   :  { %v315_v26 = vsel %vm309_vm8, %v302_v19, 0.0  ;;  %v316_v33 = vsel %vm309_vm8, %v977_v20, 0.0  ;;  %v310_v34 = vsel %vm309_vm8, %v301_v21, 0.0  ;;  %v311_v32 = vsel %vm309_vm8, %v976_v25, 0.0  ;;  %v357_v25 = vld [vmem:[%s1527_s4] sm:$0xf] }
  0xb8   :  { %v317_v36 = vadd.f32 %v316_v33, %v315_v26  ;;  %v312_v37 = vadd.f32 %v311_v32, %v310_v34  ;;  %v980_v34 = vld [vmem:[%s1525_s2 + $0x50] sm:$0xff]  ;;  %v982_v32 = vld [vmem:[%s1525_s2 + $0x60] sm:$0xff] }
  0xba   :  { %318 = vadd.xlane.f32.xlu0 %v317_v36  ;;  %313 = vadd.xlane.f32.xlu1 %v312_v37  ;;  %v984_v36 = vld [vmem:[%s1525_s2 + $0x70] sm:$0xff]  ;;  %v986_v37 = vld [vmem:[%s1525_s2 + $0x80] sm:$0xff] }
 0x143   :  { %v319_v42 = vpop.xlane.xlu0 %318  ;;  %v314_v45 = vpop.xlane.xlu1 %313 }
 0x144   :  { %v321_v48 = vsel %vm309_vm8, %v319_v42, 0.0  ;;  %v320_v49 = vsel %vm309_vm8, %v314_v45, 0.0  ;;  %v1049_v42 = vmov 1985246804  }
 0x145   :  { %v322_v29 = vadd.f32 %v321_v48, %v320_v49  ;;  %v485_v45 = vunpack.c.l.s4 %v1049_v42 }
 0x147   :  { %v323_v44 = vmul.f32 0.001953125, %v322_v29  ;;  %v486_v49 = vunpack.c.0.s8 %v485_v45 }
 0x149   :  { %v331_v50 = vrot.slane %v323_v44, %v1307_v5  ;;  %v489_v44 = vsub.s32 %v486_v49, %v1158_v24 }
 0x14b   :  { %v333_v51 = vsub.f32 %v301_v21, %v331_v50  ;;  %v334_v52 = vsub.f32 %v302_v19, %v331_v50 }
 0x14d   :  { %v336_v55 = vmul.f32 %v334_v52, %v334_v52  ;;  %v335_v56 = vmul.f32 %v333_v51, %v333_v51 }
 0x14f   :  { %v340_v57 = vcombine.high %v336_v55, %v336_v55  ;;  %v339_v58 = vcombine.high %v335_v56, %v335_v56  ;;  %v348_v0 = vsel %vm309_vm8, %v336_v55, 0.0  ;;  %v343_v2 = vsel %vm309_vm8, %v335_v56, 0.0 }
 0x151   :  { %v349_v1 = vsel %vm309_vm8, %v340_v57, 0.0  ;;  %v344_v3 = vsel %vm309_vm8, %v339_v58, 0.0 }
 0x152   :  { %v350_v6 = vadd.f32 %v349_v1, %v348_v0  ;;  %v345_v7 = vadd.f32 %v344_v3, %v343_v2 }
 0x154   :  { %351 = vadd.xlane.f32.xlu1 %v350_v6  ;;  %346 = vadd.xlane.f32.xlu0 %v345_v7 }
 0x165   :  { %379 = vperm.xlu1 %1010, %v978_v60  }
 0x169   :  { %407 = vperm.xlu1 %1010, %v979_v8  }
 0x16d   :  { %443 = vperm.xlu1 %1010, %v981_v9  }
 0x171   :  { %475 = vperm.xlu1 %1010, %v983_v10   ;;  %v991_v10 = vld [vmem:[%s1526_s3 + $0x28] sm:$0xff] }
 0x175   :  { %532 = vperm.xlu1 %1010, %v985_v11   ;;  %v990_v11 = vld [vmem:[%s1526_s3 + $0x20] sm:$0xff] }
 0x179   :  { %570 = vperm.xlu1 %1010, %v987_v12   ;;  %v993_v12 = vld [vmem:[%s1526_s3 + $0x38] sm:$0xff] }
 0x17d   :  { %628 = vperm.xlu1 %1010, %v584_v13   ;;  %v992_v13 = vld [vmem:[%s1526_s3 + $0x30] sm:$0xff] }
 0x1dd   :  { %v352_v14 = vpop.xlane.xlu1 %351  ;;  %v347_v15 = vpop.xlane.xlu0 %346 }
 0x1de   :  { %v354_v16 = vsel %vm309_vm8, %v352_v14, 0.0  ;;  %v353_v18 = vsel %vm309_vm8, %v347_v15, 0.0 }
 0x1df   :  { %v355_v19 = vadd.f32 %v354_v16, %v353_v18 }
 0x1e1   :  { %v356_v20 = vmul.f32 0.001953125, %v355_v19  ;;  %v380_v40 = vpop.permute.xlu1 %379 }
 0x1e2   :  { %v387_v56 = vrot.slane %v380_v40, %v1307_v5 }
 0x1e3   :  { %v360_v21 = vadd.f32 1e-05, %v356_v20 }
 0x1e5   :  { %1011 = vrsqrt.f32 %v360_v21  ;;  %v1355_v30 = vpop.permute.xlu1 %407 }
 0x1e9   :  { %v1357_v48 = vpop.permute.xlu1 %443 }
 0x1ed   :  { %v476_v55 = vpop.permute.xlu1 %475 }
 0x1ee   :  { %v483_v0 = vrot.slane %v476_v55, %v1307_v5  ;;  %v490_v1 = vrot.slane %v476_v55, %v489_v44 }
 0x1f1   :  { %v533_v16 = vpop.permute.xlu1 %532 }
 0x1f2   :  { %v1012_v26 = vpop.eup %1011 }
 0x1f3   :  { %v362_v33 = vmul.f32 %v1012_v26, %v357_v25 }
 0x1f5   :  { %365 = vperm.xlu0 %1009, %v362_v33   ;;  %v1405_v19 = vpop.permute.xlu1 %570 }
 0x1f9   :  { %424 = vperm.xlu0 %1009, %v980_v34   ;;  %v1409_v21 = vpop.permute.xlu1 %628 }
 0x1fd   :  { %462 = vperm.xlu0 %1009, %v982_v32  }
 0x201   :  { %513 = vperm.xlu0 %1009, %v984_v36  }
 0x205   :  { %551 = vperm.xlu0 %1009, %v986_v37  }
 0x209   :  { %623 = vperm.xlu0 %1009, %v583_v39  }
 0x270   :  { %v366_v29 = vpop.permute.xlu0 %365 }
 0x271   :  { %v373_v50 = vrot.slane %v366_v29, %v1307_v5  ;;  %v989_v5 = vld [vmem:[%s1526_s3 + $0x18] sm:$0xff] }
 0x273   :  { %v375_v57 = vmul.f32 %v373_v50, %v333_v51  ;;  %v376_v58 = vmul.f32 %v373_v50, %v334_v52  ;;  %v988_v52 = vld [vmem:[%s1526_s3 + $0x10] sm:$0xff] }
 0x274   :  { %v425_v14 = vpop.permute.xlu0 %424 }
 0x275   :  { %v389_v2 = vadd.f32 %v387_v56, %v375_v57  ;;  %v390_v3 = vadd.f32 %v387_v56, %v376_v58 }
 0x277   :  { %v393_v6 = vcombine.low %v389_v2, %v390_v3  ;;  %v394_v7 = vcombine.high %v389_v2, %v390_v3  ;;  %v1363_v60 = vmul.f32 %v483_v0, %v389_v2  ;;  %v1365_v8 = vmul.f32 %v490_v1, %v390_v3 }
 0x278   :  { %v463_v15 = vpop.permute.xlu0 %462 }
 0x279   :  { %399 = vrot.lane.b32.xlu1 %v394_v7, %s1040_s29  ;;  %397 = vrot.lane.b32.xlu0 %v393_v6, %s1040_s29  ;;  %v497_v9 = vcombine.low %v1363_v60, %v1365_v8  ;;  %v498_v51 = vcombine.high %v1363_v60, %v1365_v8 }
 0x27c   :  { %v514_v18 = vpop.permute.xlu0 %513 }
 0x27d   :  { %416 = vrot.lane.b32.xlu1 %v394_v7, %s1041_s8  ;;  %414 = vrot.lane.b32.xlu0 %v393_v6, %s1041_s8 }
 0x280   :  { %v1407_v20 = vpop.permute.xlu0 %551 }
 0x281   :  { %435 = vrot.lane.b32.xlu1 %v394_v7, %s1042_s11  ;;  %433 = vrot.lane.b32.xlu0 %v393_v6, %s1042_s11 }
 0x284   :  { %v1411_v25 = vpop.permute.xlu0 %623 }
 0x285   :  { %454 = vrot.lane.b32.xlu1 %v394_v7, %s1043_s0  ;;  %452 = vrot.lane.b32.xlu0 %v393_v6, %s1043_s0 }
 0x289   :  { %505 = vrot.lane.b32.xlu1 %v394_v7, %s1044_s18  ;;  %503 = vrot.lane.b32.xlu0 %v393_v6, %s1044_s18 }
 0x28d   :  { %522 = vrot.lane.b32.xlu1 %v393_v6, %s1045_s21  ;;  %524 = vrot.lane.b32.xlu0 %v394_v7, %s1045_s21 }
 0x291   :  { %543 = vrot.lane.b32.xlu1 %v394_v7, %s1046_s24  ;;  %541 = vrot.lane.b32.xlu0 %v393_v6, %s1046_s24 }
 0x295   :  { %562 = vrot.lane.b32.xlu1 %v394_v7, %s1047_s25  ;;  %560 = vrot.lane.b32.xlu0 %v393_v6, %s1047_s25 }
 0x299   :  { %685 = vperm.xlu1 %1010, %v989_v5   ;;  %680 = vperm.xlu0 %1009, %v988_v52  }
 0x29d   :  { %750 = vperm.xlu1 %1010, %v991_v10   ;;  %745 = vperm.xlu0 %1009, %v990_v11  }
 0x2a1   :  { %815 = vperm.xlu1 %1010, %v993_v12   ;;  %810 = vperm.xlu0 %1009, %v992_v13  }
 0x2eb   :  { %v400_v26 = vpop.permute.xlu1 %399  ;;  %v398_v33 = vpop.permute.xlu0 %397 }
 0x2ec   :  { %v401_v39 = vsel %vm32_vm1, %v398_v33, %v400_v26  ;;  %v402_v40 = vsel %vm32_vm1, %v400_v26, %v398_v33 }
 0x2ed   :  { %v410_v44 = vmul.f32 %v1355_v30, %v402_v40  ;;  %v411_v50 = vmul.f32 %v1355_v30, %v401_v39 }
 0x2ef   :  { %v417_v34 = vpop.permute.xlu1 %416  ;;  %v415_v32 = vpop.permute.xlu0 %414  ;;  %v412_v6 = vmul.f32 %v410_v44, %v1200_v46  ;;  %v413_v30 = vmul.f32 %v411_v50, %v1203_v47 }
 0x2f0   :  { %v418_v36 = vsel %vm61_vm0, %v415_v32, %v417_v34  ;;  %v419_v37 = vsel %vm61_vm0, %v417_v34, %v415_v32 }
 0x2f1   :  { %v427_v42 = vmul.f32 %v425_v14, %v419_v37  ;;  %v428_v45 = vmul.f32 %v425_v14, %v418_v36 }
 0x2f3   :  { %v436_v49 = vpop.permute.xlu1 %435  ;;  %v434_v29 = vpop.permute.xlu0 %433  ;;  %v429_v0 = vmul.f32 %v427_v42, %v1182_v35  ;;  %v430_v1 = vmul.f32 %v428_v45, %v1189_v38 }
 0x2f4   :  { %v437_v55 = vsel %vm94_vm2, %v434_v29, %v436_v49  ;;  %v438_v56 = vsel %vm94_vm2, %v436_v49, %v434_v29 }
 0x2f5   :  { %v446_v57 = vmul.f32 %v1357_v48, %v438_v56  ;;  %v447_v58 = vmul.f32 %v1357_v48, %v437_v55  ;;  %v431_v11 = vadd.f32 %v429_v0, %v412_v6  ;;  %v432_v38 = vadd.f32 %v430_v1, %v413_v30 }
 0x2f7   :  { %v455_v2 = vpop.permute.xlu1 %454  ;;  %v453_v3 = vpop.permute.xlu0 %452  ;;  %v448_v52 = vmul.f32 %v446_v57, %v1213_v53  ;;  %v449_v48 = vmul.f32 %v447_v58, %v1216_v54 }
 0x2f8   :  { %v456_v7 = vsel %vm127_vm3, %v453_v3, %v455_v2  ;;  %v457_v5 = vsel %vm127_vm3, %v455_v2, %v453_v3 }
 0x2f9   :  { %v465_v10 = vmul.f32 %v463_v15, %v457_v5  ;;  %v466_v35 = vmul.f32 %v463_v15, %v456_v7  ;;  %v450_v33 = vadd.f32 %v448_v52, %v431_v11  ;;  %v451_v53 = vadd.f32 %v449_v48, %v432_v38 }
 0x2fa   :  { %v648_v5 = vsub.s32 5, %v1158_v24  ;;  %v709_v52 = vsub.s32 2, %v1158_v24  ;;  %v778_v11 = vsub.s32 7, %v1158_v24 }
 0x2fb   :  { %v467_v12 = vmul.f32 %v465_v10, %v1221_v61  ;;  %v468_v46 = vmul.f32 %v466_v35, %v1224_v62  ;;  %v506_v13 = vpop.permute.xlu1 %505  ;;  %v504_v47 = vpop.permute.xlu0 %503  ;;  %v591_v35 = vsub.s32 4, %v1158_v24 }
 0x2fc   :  { %v507_v14 = vsel %vm171_vm4, %v504_v47, %v506_v13  ;;  %v508_v26 = vsel %vm171_vm4, %v506_v13, %v504_v47 }
 0x2fd   :  { %v469_v34 = vadd.f32 %v467_v12, %v450_v33  ;;  %v470_v54 = vadd.f32 %v468_v46, %v451_v53  ;;  %v516_v32 = vmul.f32 %v514_v18, %v507_v14  ;;  %v517_v15 = vmul.f32 %v514_v18, %v508_v26 }
 0x2ff   :  { %v523_v36 = vpop.permute.xlu1 %522  ;;  %v525_v37 = vpop.permute.xlu0 %524  ;;  %v501_v42 = vadd.f32 %v497_v9, %v469_v34  ;;  %v502_v45 = vadd.f32 %v498_v51, %v470_v54  ;;  %v518_v18 = vmul.f32 %v516_v32, %v1245_v17  ;;  %v519_v49 = vmul.f32 %v517_v15, %v1252_v22 }
 0x300   :  { %v526_v61 = vsel %vm204_vm5, %v523_v36, %v525_v37  ;;  %v527_v62 = vsel %vm204_vm5, %v525_v37, %v523_v36 }
 0x301   :  { %v535_v39 = vmul.f32 %v533_v16, %v526_v61  ;;  %v536_v40 = vmul.f32 %v533_v16, %v527_v62  ;;  %v520_v8 = vadd.f32 %v518_v18, %v501_v42  ;;  %v521_v17 = vadd.f32 %v519_v49, %v502_v45 }
 0x303   :  { %v544_v29 = vpop.permute.xlu1 %543  ;;  %v542_v44 = vpop.permute.xlu0 %541  ;;  %v537_v55 = vmul.f32 %v535_v39, %v1255_v27  ;;  %v538_v9 = vmul.f32 %v536_v40, %v1265_v41 }
 0x304   :  { %v545_v50 = vsel %vm237_vm6, %v542_v44, %v544_v29  ;;  %v546_v16 = vsel %vm237_vm6, %v544_v29, %v542_v44 }
 0x305   :  { %v554_v56 = vmul.f32 %v1407_v20, %v545_v50  ;;  %v555_v60 = vmul.f32 %v1407_v20, %v546_v16  ;;  %v539_v1 = vadd.f32 %v537_v55, %v520_v8  ;;  %v540_v41 = vadd.f32 %v538_v9, %v521_v17 }
 0x307   :  { %v556_v22 = vmul.f32 %v554_v56, %v1269_v43  ;;  %v557_v51 = vmul.f32 %v555_v60, %v1274_v4  ;;  %v563_v57 = vpop.permute.xlu1 %562  ;;  %v561_v58 = vpop.permute.xlu0 %560 }
 0x308   :  { %v564_v0 = vsel %vm270_vm7, %v561_v58, %v563_v57  ;;  %v565_v27 = vsel %vm270_vm7, %v563_v57, %v561_v58 }
 0x309   :  { %v573_v2 = vmul.f32 %v1405_v19, %v564_v0  ;;  %v574_v20 = vmul.f32 %v1405_v19, %v565_v27  ;;  %v558_v3 = vadd.f32 %v556_v22, %v539_v1  ;;  %v559_v6 = vadd.f32 %v557_v51, %v540_v41 }
 0x30a   :  { %v774_v19 = vsub.s32 3, %v1158_v24 }
 0x30b   :  { %v575_v43 = vmul.f32 %v573_v2, %v1287_v59  ;;  %v576_v4 = vmul.f32 %v574_v20, %v1290_v63 }
 0x30d   :  { %v577_v30 = vadd.f32 %v575_v43, %v558_v3  ;;  %v578_v7 = vadd.f32 %v576_v4, %v559_v6 }
 0x30f   :  { %v581_v48 = vcombine.low %v577_v30, %v578_v7  ;;  %v582_v10 = vcombine.high %v577_v30, %v578_v7 }
 0x311   :  { %v645_v59 = vrot.slane %v581_v48, %v1171_v31  ;;  %v649_v38 = vrot.slane %v581_v48, %v648_v5  ;;  %v653_v63 = vrot.slane %v582_v10, %v1171_v31  ;;  %v657_v12 = vrot.slane %v582_v10, %v648_v5 }
 0x312   :  { %v710_v46 = vrot.slane %v581_v48, %v709_v52  ;;  %v714_v13 = vrot.slane %v581_v48, %v713_v23  ;;  %v718_v47 = vrot.slane %v582_v10, %v709_v52  ;;  %v722_v14 = vrot.slane %v582_v10, %v713_v23 }
 0x313   :  { %v665_v26 = vrot.slane %v645_v59, %v1171_v31  ;;  %v669_v33 = vrot.slane %v649_v38, %v1171_v31  ;;  %v673_v53 = vrot.slane %v653_v63, %v1171_v31  ;;  %v677_v34 = vrot.slane %v657_v12, %v1171_v31 }
 0x314   :  { %v686_v54 = vpop.permute.xlu1 %685  ;;  %v681_v24 = vpop.permute.xlu0 %680  ;;  %v730_v32 = vrot.slane %v710_v46, %v709_v52  ;;  %v734_v15 = vrot.slane %v714_v13, %v709_v52  ;;  %v738_v61 = vrot.slane %v718_v47, %v709_v52  ;;  %v742_v62 = vrot.slane %v722_v14, %v709_v52 }
 0x315   :  { %v690_v36 = vmul.f32 %v686_v54, %v665_v26  ;;  %v691_v37 = vmul.f32 %v686_v54, %v669_v33  ;;  %v1487_v39 = vmul.f32 %v686_v54, %v673_v53  ;;  %v1489_v40 = vmul.f32 %v686_v54, %v677_v34 }
 0x316   :  { %v688_v42 = vmul.f32 %v681_v24, %v665_v26  ;;  %v689_v45 = vmul.f32 %v681_v24, %v669_v33  ;;  %v588_v18 = vrot.slane %v581_v48, %v1166_v28  ;;  %v592_v49 = vrot.slane %v581_v48, %v591_v35 }
 0x317   :  { %v775_v29 = vrot.slane %v581_v48, %v774_v19  ;;  %v779_v44 = vrot.slane %v581_v48, %v778_v11  ;;  %v596_v16 = vrot.slane %v582_v10, %v1166_v28  ;;  %v600_v55 = vrot.slane %v582_v10, %v591_v35 }
 0x318   :  { %v751_v31 = vpop.permute.xlu1 %750  ;;  %v746_v50 = vpop.permute.xlu0 %745  ;;  %v783_v9 = vrot.slane %v582_v10, %v774_v19  ;;  %v787_v56 = vrot.slane %v582_v10, %v778_v11  ;;  %v692_v60 = vmul.f32 %v681_v24, %v673_v53  ;;  %v693_v8 = vmul.f32 %v681_v24, %v677_v34 }
 0x319   :  { %v755_v17 = vmul.f32 %v751_v31, %v730_v32  ;;  %v756_v22 = vmul.f32 %v751_v31, %v734_v15  ;;  %v753_v51 = vmul.f32 %v746_v50, %v730_v32  ;;  %v754_v57 = vmul.f32 %v746_v50, %v734_v15 }
 0x31a   :  { %v757_v58 = vmul.f32 %v746_v50, %v738_v61  ;;  %v758_v0 = vmul.f32 %v746_v50, %v742_v62  ;;  %v608_v27 = vrot.slane %v588_v18, %v1166_v28  ;;  %v612_v1 = vrot.slane %v592_v49, %v1166_v28 }
 0x31b   :  { %v795_v41 = vrot.slane %v775_v29, %v774_v19  ;;  %v799_v2 = vrot.slane %v779_v44, %v774_v19  ;;  %v616_v6 = vrot.slane %v596_v16, %v1166_v28  ;;  %v620_v43 = vrot.slane %v600_v55, %v1166_v28 }
 0x31c   :  { %v816_v20 = vpop.permute.xlu1 %815  ;;  %v811_v3 = vpop.permute.xlu0 %810  ;;  %v803_v4 = vrot.slane %v783_v9, %v774_v19  ;;  %v807_v30 = vrot.slane %v787_v56, %v774_v19  ;;  %v633_v7 = vmul.f32 %v1409_v21, %v608_v27  ;;  %v634_v5 = vmul.f32 %v1409_v21, %v612_v1 }
 0x31d   :  { %v820_v52 = vmul.f32 %v816_v20, %v795_v41  ;;  %v821_v23 = vmul.f32 %v816_v20, %v799_v2  ;;  %v631_v48 = vmul.f32 %v1411_v25, %v608_v27  ;;  %v632_v10 = vmul.f32 %v1411_v25, %v612_v1 }
 0x31e   :  { %v818_v35 = vmul.f32 %v811_v3, %v795_v41  ;;  %v819_v11 = vmul.f32 %v811_v3, %v799_v2  ;;  %v698_v59 = vadd.f32 %v690_v36, %v633_v7  ;;  %v699_v38 = vadd.f32 %v691_v37, %v634_v5 }
 0x31f   :  { %v635_v63 = vmul.f32 %v1411_v25, %v616_v6  ;;  %v636_v28 = vmul.f32 %v1411_v25, %v620_v43  ;;  %v696_v12 = vadd.f32 %v688_v42, %v631_v48  ;;  %v697_v19 = vadd.f32 %v689_v45, %v632_v10 }
 0x320   :  { %v822_v46 = vmul.f32 %v811_v3, %v803_v4  ;;  %v823_v13 = vmul.f32 %v811_v3, %v807_v30  ;;  %v763_v47 = vadd.f32 %v755_v17, %v698_v59  ;;  %v764_v14 = vadd.f32 %v756_v22, %v699_v38 }
 0x321   :  { %v700_v26 = vadd.f32 %v692_v60, %v635_v63  ;;  %v701_v33 = vadd.f32 %v693_v8, %v636_v28  ;;  %v761_v53 = vadd.f32 %v753_v51, %v696_v12  ;;  %v762_v34 = vadd.f32 %v754_v57, %v697_v19 }
 0x322   :  { %v637_v54 = vmul.f32 %v1409_v21, %v616_v6  ;;  %v638_v24 = vmul.f32 %v1409_v21, %v620_v43  ;;  %v759_v32 = vmul.f32 %v751_v31, %v738_v61  ;;  %v828_v15 = vadd.f32 %v820_v52, %v763_v47 }
 0x323   :  { %v829_v36 = vadd.f32 %v821_v23, %v764_v14  ;;  %v765_v37 = vadd.f32 %v757_v58, %v700_v26  ;;  %v760_v18 = vmul.f32 %v751_v31, %v742_v62  ;;  %v826_v25 = vadd.f32 %v818_v35, %v761_v53  ;;  %v882_v53 = vld [vmem:[%s1528_s5] sm:$0xff] }
 0x324   :  { %v827_v42 = vadd.f32 %v819_v11, %v762_v34  ;;  %v766_v45 = vadd.f32 %v758_v0, %v701_v33  ;;  %v702_v44 = vadd.f32 %v1487_v39, %v637_v54  ;;  %v703_v50 = vadd.f32 %v1489_v40, %v638_v24  ;;  %v883_v24 = vld [vmem:[%s1528_s5 + $0x8] sm:$0xff] }
 0x325   :  { %v837_v49 = vadd.f32 %v829_v36, %v828_v15  ;;  %v830_v29 = vadd.f32 %v822_v46, %v765_v37  ;;  %v824_v9 = vmul.f32 %v816_v20, %v803_v4  ;;  %v825_v56 = vmul.f32 %v816_v20, %v807_v30  ;;  %v995_v37 = vld [vmem:[%s1528_s5 + $0x18] sm:$0xff] }
 0x326   :  { %v834_v16 = vadd.f32 %v827_v42, %v826_v25  ;;  %v831_v55 = vadd.f32 %v823_v13, %v766_v45  ;;  %v767_v21 = vadd.f32 %v759_v32, %v702_v44  ;;  %v768_v61 = vadd.f32 %v760_v18, %v703_v50 }
 0x327   :  { %838 = vadd.xlane.f32.xlu1 %v837_v49 }
 0x328   :  { %835 = vadd.xlane.f32.xlu0 %v834_v16  ;;  %v840_v60 = vadd.f32 %v831_v55, %v830_v29  ;;  %v832_v8 = vadd.f32 %v824_v9, %v767_v21  ;;  %v833_v62 = vadd.f32 %v825_v56, %v768_v61 }
 0x32a   :  { %v843_v31 = vadd.f32 %v833_v62, %v832_v8 }
 0x32c   :  { %841 = vadd.xlane.f32.xlu0 %v840_v60 }
 0x330   :  { %844 = vadd.xlane.f32.xlu0 %v843_v31 }
 0x3b0   :  { %v839_v57 = vpop.xlane.xlu1 %838 }
 0x3b1   :  { %v836_v17 = vpop.xlane.xlu0 %835 }
 0x3b5   :  { %v842_v22 = vpop.xlane.xlu0 %841 }
 0x3b6   :  { %v846_v51 = vadd.f32 %v842_v22, %v836_v17 }
 0x3b8   :  { %v848_v39 = vmul.f32 0.001953125, %v846_v51 }
 0x3b9   :  { %v845_v40 = vpop.xlane.xlu0 %844 }
 0x3ba   :  { %v847_v58 = vadd.f32 %v845_v40, %v839_v57  ;;  %v850_v0 = vsub.f32 %v826_v25, %v848_v39  ;;  %v851_v27 = vsub.f32 %v827_v42, %v848_v39  ;;  %v854_v1 = vsub.f32 %v830_v29, %v848_v39 }
 0x3bb   :  { %v855_v41 = vsub.f32 %v831_v55, %v848_v39 }
 0x3bc   :  { %v849_v2 = vmul.f32 0.001953125, %v847_v58  ;;  %v858_v20 = vmul.f32 %v850_v0, %v850_v0  ;;  %v859_v3 = vmul.f32 %v851_v27, %v851_v27  ;;  %v862_v6 = vmul.f32 %v854_v1, %v854_v1 }
 0x3bd   :  { %v863_v43 = vmul.f32 %v855_v41, %v855_v41 }
 0x3be   :  { %v866_v4 = vadd.f32 %v859_v3, %v858_v20  ;;  %v852_v30 = vsub.f32 %v828_v15, %v849_v2  ;;  %v853_v7 = vsub.f32 %v829_v36, %v849_v2  ;;  %v856_v5 = vsub.f32 %v832_v8, %v849_v2  ;;  %v994_v15 = vld [vmem:[%s1528_s5 + $0x10] sm:$0xff]  ;;  %s1050_s5 = smov [#allocation2]  }
 0x3bf   :  { %v857_v52 = vsub.f32 %v833_v62, %v849_v2  ;;  %v872_v10 = vadd.f32 %v863_v43, %v862_v6  ;;  %s950_s1 = sshll.u32 %s1050_s5, 4  ;;  %s951_s1 = int_to_ptr.vmem [resolvable:$true] %s950_s1 }
 0x3c0   :  { %867 = vadd.xlane.f32.xlu1 %v866_v4  ;;  %v860_v23 = vmul.f32 %v852_v30, %v852_v30  ;;  %v861_v48 = vmul.f32 %v853_v7, %v853_v7  ;;  %v864_v11 = vmul.f32 %v856_v5, %v856_v5  ;;  %s1017_s23 = scalar_lea.vmem %s951_s1, 1024  ;;  %p1022_p1 = scmp.lt.s32.totalorder %s951_s1, %s951_s1 }
 0x3c1   :  { %v865_v59 = vmul.f32 %v857_v52, %v857_v52  ;;  %p1018_p0 = scmp.ne.s32.totalorder %s951_s1, %s1017_s23  ;;  %p1023_p2 = scmp.lt.s32.totalorder %s1017_s23, %s1017_s23 }
 0x3c2   :  { %v869_v35 = vadd.f32 %v861_v48, %v860_v23 }
 0x3c3   :  { %v875_v38 = vadd.f32 %v865_v59, %v864_v11  ;;  %p1024_p3 = por %p1023_p2, %p1022_p1 }
 0x3c4   :  { %873 = vadd.xlane.f32.xlu1 %v872_v10  ;;  %870 = vadd.xlane.f32.xlu0 %v869_v35 }
 0x3c5   :  { %p1025_p4 = pnand %p1024_p3, %p1018_p0 }
 0x3c8   :  { %876 = vadd.xlane.f32.xlu0 %v875_v38 }
 0x449   :  { %v868_v63 = vpop.xlane.xlu1 %867 }
 0x44d   :  { %v874_v28 = vpop.xlane.xlu1 %873  ;;  %v871_v12 = vpop.xlane.xlu0 %870 }
 0x44e   :  { %v878_v19 = vadd.f32 %v874_v28, %v868_v63 }
 0x450   :  { %v880_v46 = vmul.f32 0.001953125, %v878_v19 }
 0x451   :  { %v877_v13 = vpop.xlane.xlu0 %876 }
 0x452   :  { %v887_v47 = vadd.f32 1e-05, %v880_v46  ;;  %v879_v14 = vadd.f32 %v877_v13, %v871_v12 }
 0x454   :  { %1013 = vrsqrt.f32 %v887_v47  ;;  %v881_v26 = vmul.f32 0.001953125, %v879_v14 }
 0x456   :  { %v888_v33 = vadd.f32 1e-05, %v881_v26 }
 0x458   :  { %1015 = vrsqrt.f32 %v888_v33 }
 0x461   :  { %v1014_v34 = vpop.eup %1013 }
 0x462   :  { %v891_v54 = vmul.f32 %v1014_v34, %v882_v53 }
 0x464   :  { %895 = vperm.xlu1 %1010, %v891_v54  }
 0x465   :  { %v1016_v32 = vpop.eup %1015 }
 0x466   :  { %v892_v36 = vmul.f32 %v1016_v32, %v883_v24 }
 0x468   :  { %913 = vperm.xlu1 %1010, %v994_v15   ;;  %900 = vperm.xlu0 %1009, %v892_v36  }
 0x46c   :  { %918 = vperm.xlu1 %1010, %v995_v37  }
 0x4df   :  { %v896_v18 = vpop.permute.xlu1 %895 }
 0x4e0   :  { %v903_v25 = vmul.f32 %v896_v18, %v850_v0  ;;  %v904_v42 = vmul.f32 %v896_v18, %v851_v27  ;;  %v907_v45 = vmul.f32 %v896_v18, %v854_v1  ;;  %v908_v49 = vmul.f32 %v896_v18, %v855_v41 }
 0x4e3   :  { %v914_v29 = vpop.permute.xlu1 %913  ;;  %v901_v44 = vpop.permute.xlu0 %900 }
 0x4e4   :  { %v921_v50 = vadd.f32 %v914_v29, %v903_v25  ;;  %v922_v16 = vadd.f32 %v914_v29, %v904_v42  ;;  %v925_v55 = vadd.f32 %v914_v29, %v907_v45  ;;  %v926_v9 = vadd.f32 %v914_v29, %v908_v49 }
 0x4e5   :  { %v905_v56 = vmul.f32 %v901_v44, %v852_v30  ;;  %v906_v21 = vmul.f32 %v901_v44, %v853_v7  ;;  %v909_v61 = vmul.f32 %v901_v44, %v856_v5  ;;  %v910_v60 = vmul.f32 %v901_v44, %v857_v52 }
 0x4e6   :  { %v929_v8 = vmax.f32 %v921_v50, 0.0  ;;  %v930_v62 = vmax.f32 %v922_v16, 0.0  ;;  %v933_v31 = vmax.f32 %v925_v55, 0.0  ;;  %v934_v17 = vmax.f32 %v926_v9, 0.0 }
 0x4e7   :  { %v919_v22 = vpop.permute.xlu1 %918 }
 0x4e8   :  { %937 = vst [vmem:[#allocation2] sm:$0xff] %v929_v8  ;;  %938 = vst [vmem:[#allocation2 + $0x8] sm:$0xff] %v930_v62  ;;  %v923_v51 = vadd.f32 %v919_v22, %v905_v56  ;;  %v924_v39 = vadd.f32 %v919_v22, %v906_v21  ;;  %v927_v57 = vadd.f32 %v919_v22, %v909_v61 }
 0x4e9   :  { %941 = vst [vmem:[#allocation2 + $0x20] sm:$0xff] %v933_v31  ;;  %942 = vst [vmem:[#allocation2 + $0x28] sm:$0xff] %v934_v17  ;;  %v928_v40 = vadd.f32 %v919_v22, %v910_v60 }
 0x4ea   :  { %v931_v58 = vmax.f32 %v923_v51, 0.0  ;;  %v932_v0 = vmax.f32 %v924_v39, 0.0  ;;  %v935_v27 = vmax.f32 %v927_v57, 0.0 }
 0x4eb   :  { %v936_v1 = vmax.f32 %v928_v40, 0.0 }
 0x4ec   :  { %939 = vst [vmem:[#allocation2 + $0x10] sm:$0xff] %v931_v58  ;;  %940 = vst [vmem:[#allocation2 + $0x18] sm:$0xff] %v932_v0 }
 0x4ed   :  { %943 = vst [vmem:[#allocation2 + $0x30] sm:$0xff] %v935_v27  ;;  %944 = vst [vmem:[#allocation2 + $0x38] sm:$0xff] %v936_v1 }
 0x4ee   :  { %1028 = shalt.err (!%p1025_p4)
}
 0x4ef   :  { %s1051_s26 = smov 256  }
 0x4f0   :  { %956 = dma.vmem_to_hbm [thread:$0]  %s951_s1, 1024, %s1529_s6, [#allocation3], %s1051_s26, %s1051_s26, %s1041_s8  }
 0x4f1   :  { %1037 = dma.done.wait [#allocation3], 1024  }
 0x4f2   :  { %1038 = vsyncadd [#allocation3], 4294966272 }
 0x4f3   :  { %960 = vsyncpa [#allocation3], 1 }

</bundles_post_ra>
